<compile_context>
chip_gen: v7x
topology: tpu7x:2x2x1
jax: 0.10.0
libtpu: 0.0.40
codegen_flags: <defaults>
</compile_context>

<pallas_src>
import functools

import jax
import jax.numpy as jnp
from jax import lax
from jax.experimental import pallas as pl
from jax.experimental.pallas import tpu as pltpu


_MIB = 1024 * 1024


def _vmem_limit(nbytes: int) -> int:
    """Scoped-VMEM request: footprint + 50% headroom, clamped to [16, 56] MiB."""
    return int(min(56 * _MIB, max(nbytes + nbytes // 2 + _MIB, 16 * _MIB)))


def _l2_normalize_rows_kernel(x_ref, o_ref, *, scale):
    """One (rows, D) tile: row <- scale * row / max(||row||, 1e-12); bf16 out."""
    x = x_ref[...].astype(jnp.float32)
    # F.normalize eps semantics: x / max(||x||, 1e-12) == x * rsqrt(max(sum_sq, 1e-24))
    inv = lax.rsqrt(jnp.maximum(jnp.sum(x * x, axis=-1, keepdims=True), 1e-24))
    o_ref[...] = (x * (inv * scale)).astype(o_ref.dtype)


def _scaled_cosine_matmul_kernel(xn_ref, wn_ref, o_ref):
    """One (TB, TC) logits tile: (s*normalize(x)) @ normalize(w)^T, f32 accumulation."""
    o_ref[...] = lax.dot_general(
        xn_ref[...],
        wn_ref[...],
        dimension_numbers=(((1,), (1,)), ((), ())),   # contract the D axes (A @ B^T)
        preferred_element_type=jnp.float32,
    )


def _rows_tile(n: int, d: int, in_itemsize: int, budget: int) -> int:
    """Row tile for the normalization prepasses (bandwidth-bound; any multiple of 8)."""
    if n <= 8:
        return n
    per_row = d * (2 * in_itemsize + 2 * 2 + 16)   # dbl-buffered in/out + f32 temps
    r = min(n // 8 * 8, 2048)
    while r > 8 and r * per_row > budget:
        r = max(8, (r // 2) // 8 * 8)
    return r


def _l2_normalize_rows(x: jax.Array, scale: float, budget: int) -> jax.Array:
    """[N, D] -> bf16 [N, D] with each row scaled to `scale` L2 norm."""
    n, d = x.shape
    rt = _rows_tile(n, d, x.dtype.itemsize, budget)
    per_step = rt * d * (2 * x.dtype.itemsize + 2 * 2 + 16)
    return pl.pallas_call(
        functools.partial(_l2_normalize_rows_kernel, scale=float(scale)),
        out_shape=jax.ShapeDtypeStruct((n, d), jnp.bfloat16),
        grid=(pl.cdiv(n, rt),),
        in_specs=[pl.BlockSpec((rt, d), lambda i: (i, 0))],
        out_specs=pl.BlockSpec((rt, d), lambda i: (i, 0)),
        compiler_params=pltpu.CompilerParams(
            dimension_semantics=("parallel",),
            vmem_limit_bytes=_vmem_limit(per_step)),
        cost_estimate=pl.CostEstimate(
            flops=3 * n * d, transcendentals=n,
            bytes_accessed=n * d * (x.dtype.itemsize + 2)),
    )(x)


def normface_linear(feats: jax.Array, weight: jax.Array, s: float = 32.0,
                    *, tb: int = 512, tc: int = 512) -> jax.Array:
    """feats: [B, D], weight: [C, D] (nn.Linear layout) -> logits [B, C] float32."""
    B, D = feats.shape
    C, D2 = weight.shape
    assert D == D2, "feature dims must match"

    # ---- Passes A/B: normalize rows once; fold s into the (small) feats operand.
    prepass_budget = 24 * _MIB
    xn = _l2_normalize_rows(feats, s, prepass_budget)      # (B, D) bf16, s*normalize
    wn = _l2_normalize_rows(weight, 1.0, prepass_budget)   # (C, D) bf16, normalize

    # ---- Pass C tiles.  TB == flops per streamed-weight byte: keep it large;
    # shrink TC first when the un-tiled D axis would blow the VMEM budget.
    TB = B if B < 8 else min(tb, B // 8 * 8)
    TC = C if C < 128 else min(tc, C // 128 * 128)

    def p2_bytes(tb_, tc_):
        # double-buffered bf16 lhs + bf16 rhs + f32 output tile
        return 2 * (tb_ * D * 2 + tc_ * D * 2 + tb_ * tc_ * 4)

    budget = 36 * _MIB
    while p2_bytes(TB, TC) > budget and TC > 128:
        TC = max(128, (TC // 2) // 128 * 128)
    while p2_bytes(TB, TC) > budget and TB > 8:
        TB = max(8, (TB // 2) // 8 * 8)

    grid = (pl.cdiv(B, TB), pl.cdiv(C, TC))
    bytes_accessed = B * D * 2 + grid[0] * C * D * 2 + B * C * 4

    out = pl.pallas_call(
        _scaled_cosine_matmul_kernel,
        out_shape=jax.ShapeDtypeStruct((B, C), jnp.float32),
        grid=grid,
        in_specs=[
            pl.BlockSpec((TB, D), lambda b, c: (b, 0)),   # s*normalize(feats) tile
            pl.BlockSpec((TC, D), lambda b, c: (c, 0)),   # normalize(weight) tile
        ],
        out_specs=pl.BlockSpec((TB, TC), lambda b, c: (b, c)),
        compiler_params=pltpu.CompilerParams(
            # No cross-step state left in the hot loop -> both axes independent
            # (megacore / v7x dual-TC shardable on either axis).
            dimension_semantics=("parallel", "parallel"),
            vmem_limit_bytes=_vmem_limit(p2_bytes(TB, TC))),
        cost_estimate=pl.CostEstimate(
            flops=2 * B * C * D,
            transcendentals=0,
            bytes_accessed=bytes_accessed),
    )(xn, wn)
    return out


if __name__ == "__main__":
    key = jax.random.PRNGKey(0)
    k_x, k_w = jax.random.split(key)

    batch = 8
    in_features = 32
    out_features = 16
    s = 32.0

    # deterministic inputs / parameters (weight ~ N(0, 0.01), as in nn.init.normal_)
    feats = jax.random.normal(k_x, (batch, in_features), dtype=jnp.float32)
    weight = 0.01 * jax.random.normal(k_w, (out_features, in_features), dtype=jnp.float32)

    logits = normface_linear(feats, weight, s=s)
    jax.block_until_ready(logits)

    # pure-JAX f32 reference
    xn_ref = feats / jnp.maximum(jnp.linalg.norm(feats, axis=-1, keepdims=True), 1e-12)
    wn_ref = weight / jnp.maximum(jnp.linalg.norm(weight, axis=-1, keepdims=True), 1e-12)
    ref = s * (xn_ref @ wn_ref.T)

    assert logits.shape == ref.shape
    # bf16 MXU operands (f32 accumulation): allow bf16-level tolerance on s*cos.
    max_diff = jnp.max(jnp.abs(logits - ref))
    assert jnp.allclose(logits, ref, atol=0.25, rtol=0.02), (
        f"mismatch vs reference: max abs diff {max_diff}")
    print("KERNEL_OK")
</pallas_src>

<mosaic_0001>
module attributes {stable_mosaic.version = 11 : i64} {
  func.func @_l2_normalize_rows_kernel(%arg0: i32, %arg1: memref<8x32xf32, #tpu.memory_space<vmem>>, %arg2: memref<8x32xbf16, #tpu.memory_space<vmem>>) attributes {dimension_semantics = [#tpu.dimension_semantics<parallel>], iteration_bounds = array<i64: 1>, scalar_prefetch = 0 : i64, scratch_operands = 0 : i64, tpu.core_type = #tpu.core_type<tc>, window_params = [{transform_indices = @transform_0, window_bounds = array<i64: 8, 32>}, {transform_indices = @transform_1, window_bounds = array<i64: 8, 32>}]} {
    %c0 = arith.constant 0 : index
    %c0_0 = arith.constant 0 : index
    %0 = vector.load %arg1[%c0, %c0_0] : memref<8x32xf32, #tpu.memory_space<vmem>>, vector<8x32xf32>
    %1 = arith.mulf %0, %0 : vector<8x32xf32>
    %cst = arith.constant dense<0.000000e+00> : vector<8xf32>
    %2 = vector.multi_reduction <add>, %1, %cst [1] : vector<8x32xf32> to vector<8xf32>
    %3 = vector.shape_cast %2 : vector<8xf32> to vector<8x1xf32>
    %cst_1 = arith.constant 1.000000e-24 : f32
    %4 = vector.broadcast %cst_1 : f32 to vector<8x1xf32>
    %5 = arith.maximumf %3, %4 : vector<8x1xf32>
    %6 = math.rsqrt %5 : vector<8x1xf32>
    %cst_2 = arith.constant 3.200000e+01 : f32
    %7 = vector.broadcast %cst_2 : f32 to vector<8x1xf32>
    %8 = arith.mulf %6, %7 : vector<8x1xf32>
    %9 = vector.broadcast %8 : vector<8x1xf32> to vector<8x32xf32>
    %10 = arith.mulf %0, %9 : vector<8x32xf32>
    %11 = arith.truncf %10 : vector<8x32xf32> to vector<8x32xbf16>
    %c0_3 = arith.constant 0 : index
    %c0_4 = arith.constant 0 : index
    %12 = vector.load %arg2[%c0_3, %c0_4] : memref<8x32xbf16, #tpu.memory_space<vmem>>, vector<8x32xbf16>
    tpu.vector_store %arg2[%c0_3, %c0_4], %11 {strides = array<i32>} : memref<8x32xbf16, #tpu.memory_space<vmem>>, vector<8x32xbf16>,
    return
  }
  func.func @transform_0(%arg0: i32) -> (i32, i32) {
    %c0_i32 = arith.constant 0 : i32
    %c0_i32_0 = arith.constant 0 : i32
    return %arg0, %c0_i32 : i32, i32
  }
  func.func @transform_1(%arg0: i32) -> (i32, i32) {
    %c0_i32 = arith.constant 0 : i32
    %c0_i32_0 = arith.constant 0 : i32
    return %arg0, %c0_i32 : i32, i32
  }
}

</mosaic_0001>

<bundles_post_ra>
// kernel: tpu_custom_call.1
= control target key start
LH: loop header
LB: loop body
LE: loop exit
PB: predicated region body
PF: predicated region fallthrough
CT: control target
= control target key end

     0   :  { %6 = vsyncpa [#allocation3], 0  ;;  %s137_s0 = inlined_call_operand.hbm [shape: f32[8,32], index: 0, kind: input, shape index: {}]   ;;  %s138_s1 = inlined_call_operand.hbm [shape: bf16[8,32], index: 1, kind: output, shape index: {}]  }
   0x1   :  { %7 = vsyncpa [#allocation4], 0  ;;  %s101_s6 = smov [#allocation2]   ;;  %s53_s10 = scalar_lea.hbm %s137_s0, 128 }
   0x2   :  { %s14_s7 = sshll.u32 %s101_s6, 4  ;;  %p54_p0 = scmp.ne.s32.totalorder %s137_s0, %s53_s10  ;;  %s15_s7 = int_to_ptr.vmem [resolvable:$true] %s14_s7 }
   0x3   :  { %p57_p1 = scmp.lt.u32.totalorder %s53_s10, %s137_s0 }
   0x5   :  { %p59_p2 = pnand %p57_p1, %p54_p0 }
   0x7   :  { %62 = shalt.err (!%p59_p2)
}
   0x8   :  { %s63_s15 = scalar_lea.vmem %s15_s7, 128  ;;  %p68_p4 = scmp.lt.s32.totalorder %s15_s7, %s15_s7 }
   0x9   :  { %p64_p3 = scmp.ne.s32.totalorder %s15_s7, %s63_s15  ;;  %p69_p5 = scmp.lt.s32.totalorder %s63_s15, %s63_s15 }
   0xb   :  { %p70_p6 = por %p69_p5, %p68_p4 }
   0xd   :  { %p71_p7 = pnand %p70_p6, %p64_p3 }
   0xf   :  { %74 = shalt.err (!%p71_p7)
}
  0x10   :  { %17 = dma.hbm_to_vmem [thread:$0]  %s137_s0, 128, %s15_s7, [#allocation3]  }
  0x11   :  { %97 = dma.done.wait [#allocation3], 128  }
  0x12   :  { %98 = vsyncadd [#allocation3], 4294967168  ;;  %v21_v0 = vld [vmem:[#allocation2] sm:$0xff]  ;;  %vm23_vm0 = vcmask 261120   ;;  %s102_s18 = smov [#allocation5]   ;;  %vm32_vm1 = vcmask 257024  }
  0x13   :  { %v22_v1 = vmul.f32 %v21_v0, %v21_v0  ;;  %s40_s19 = sshll.u32 %s102_s18, 4  ;;  %s41_s19 = int_to_ptr.vmem [resolvable:$true] %s40_s19 }
  0x14   :  { %s75_s0 = scalar_lea.vmem %s41_s19, 64  ;;  %p80_p9 = scmp.lt.s32.totalorder %s41_s19, %s41_s19 }
  0x15   :  { %v24_v2 = vsel %vm23_vm0, %v22_v1, 0.0  ;;  %p76_p8 = scmp.ne.s32.totalorder %s41_s19, %s75_s0  ;;  %p81_p10 = scmp.lt.s32.totalorder %s75_s0, %s75_s0 }
  0x16   :  { %25 = vadd.xlane.f32.xlu0 %v24_v2 }
  0x17   :  { %p82_p11 = por %p81_p10, %p80_p9 }
  0x19   :  { %p83_p12 = pnand %p82_p11, %p76_p8 }
  0xa3   :  { %v26_v3 = vpop.xlane.xlu0 %25 }
  0xa4   :  { %v27_v4 = vmax.f32 %v26_v3, 1e-24 }
  0xa6   :  { %51 = vrsqrt.f32 %v27_v4 }
  0xb0   :  { %v52_v5 = vpop.eup %51 }
  0xb1   :  { %v29_v6 = vmul.f32 32.0, %v52_v5 }
  0xb3   :  { %v30_v7 = vmul.f32 %v29_v6, %v21_v0 }
  0xb5   :  { %v31_v8 = vpack.c.bf16 %v30_v7, %v30_v7 }
  0xb7   :  { %33 = vst.msk [vmem:[#allocation5] sm:$0xf] %vm32_vm1, %v31_v8 }
  0xb8   :  { %86 = shalt.err (!%p83_p12)
}
  0xb9   :  { %s87_s22 = scalar_lea.hbm %s138_s1, 64 }
  0xba   :  { %p88_p13 = scmp.ne.s32.totalorder %s138_s1, %s87_s22  ;;  %p91_p0 = scmp.lt.u32.totalorder %s87_s22, %s138_s1 }
  0xbc   :  { %p93_p1 = pnand %p91_p0, %p88_p13 }
  0xbe   :  { %96 = shalt.err (!%p93_p1)
}
  0xbf   :  { %43 = dma.vmem_to_hbm [thread:$0]  %s41_s19, 64, %s138_s1, [#allocation4]  }
  0xc0   :  { %99 = dma.done.wait [#allocation4], 64  }
  0xc1   :  { %100 = vsyncadd [#allocation4], 4294967232 }
  0xc2   :  { %47 = vsyncpa [#allocation3], 1 }
  0xc3   :  { %48 = vsyncpa [#allocation4], 1 }

</bundles_post_ra>
